<compile_context>
chip_gen: v7x
topology: tpu7x:2x2x1
jax: 0.10.0
libtpu: 0.0.40
codegen_flags: <defaults>
</compile_context>

<pallas_src>
from functools import partial

import jax
import jax.numpy as jnp
import numpy as np
from jax.experimental import pallas as pl
from jax.experimental.pallas import tpu as pltpu


# ---------------------------------------------------------------------------
# Kernel
# ---------------------------------------------------------------------------
def _make_scale_sub_kernel(gamma):
    """Returns kernel computing o = gamma * (a - b) with gamma as a constant."""
    gamma_c = np.float32(gamma)

    def kernel(a_ref, b_ref, o_ref):
        o_ref[...] = gamma_c * (a_ref[...] - b_ref[...])

    return kernel


# ---------------------------------------------------------------------------
# Lane-dense 2D view + tile sizing helpers (all static, shape-derived ints)
# ---------------------------------------------------------------------------
def _lane_dense_view(n_elems):
    """Pick (rows, lane) with rows*lane == n_elems and lane a multiple of 128."""
    for lane in (1024, 512, 2048, 4096, 256, 128):
        if n_elems % lane == 0:
            return n_elems // lane, lane
    # Fallback for odd sizes: single full-extent block (still correct).
    return 1, n_elems


def _pick_tile_rows(rows, lane, max_tile_bytes):
    """Rows per block: ~max_tile_bytes of f32, multiple of 8, or full extent."""
    target = max(1, max_tile_bytes // (lane * 4))
    target = (target // 8) * 8
    if target < 8:
        target = 8
    if target >= rows:
        return rows, 1                      # one block covering the whole array
    return target, pl.cdiv(rows, target)


# ---------------------------------------------------------------------------
# Public wrapper (jitted end-to-end so split / repack fuse with neighbors)
# ---------------------------------------------------------------------------
@partial(jax.jit, static_argnames=("gamma", "max_tile_bytes"))
def multiple_original_layer(net_input, minus_output, *, gamma,
                            max_tile_bytes=2 * 1024 * 1024):
    """gamma: python float; net_input: (B, 2, H, W) float32 real/imag planes;
    minus_output: (B, H, W) complex64.  Returns squeezed complex64 output."""
    B, C, H, W = net_input.shape
    assert C == 2, "channel axis must hold (real, imag) planes"

    # Complex -> planar float32 (fused by XLA into one read + one write pass).
    mo_planes = jnp.stack(
        [jnp.real(minus_output), jnp.imag(minus_output)], axis=1
    ).astype(jnp.float32)

    # Lane-dense flattened view of the planar problem (pure reshape, no copy).
    n_elems = B * 2 * H * W
    rows, lane = _lane_dense_view(n_elems)
    tile_rows, num_tiles = _pick_tile_rows(rows, lane, max_tile_bytes)

    a2d = net_input.astype(jnp.float32).reshape(rows, lane)
    b2d = mo_planes.reshape(rows, lane)

    kernel = _make_scale_sub_kernel(gamma)

    out_flat = pl.pallas_call(
        kernel,
        out_shape=jax.ShapeDtypeStruct((rows, lane), jnp.float32),
        grid=(num_tiles,),
        in_specs=[
            pl.BlockSpec((tile_rows, lane), lambda i: (i, 0)),
            pl.BlockSpec((tile_rows, lane), lambda i: (i, 0)),
        ],
        out_specs=pl.BlockSpec((tile_rows, lane), lambda i: (i, 0)),
        compiler_params=pltpu.CompilerParams(
            dimension_semantics=("parallel",),
            # 3 arrays x 2 buffers x <=2 MiB tiles ~= 12 MiB; 32 MiB is safe on
            # v5e / v6e (128 MiB VMEM) and v7x (64 MiB VMEM).
            vmem_limit_bytes=32 * 1024 * 1024,
        ),
    )(a2d, b2d)

    # Planar float32 -> complex64 repack (fused by XLA), then torch.squeeze.
    out_planes = out_flat.reshape(B, 2, H, W)
    out_c = jax.lax.complex(out_planes[:, 0], out_planes[:, 1]).astype(jnp.complex64)
    return jnp.squeeze(out_c)


# ---------------------------------------------------------------------------
# Self-test
# ---------------------------------------------------------------------------
def _reference(gamma, net_input, minus_output):
    ref_c = jnp.squeeze(
        jax.lax.complex(net_input[:, 0], net_input[:, 1]).astype(jnp.complex64)
    )
    return (gamma * (ref_c - minus_output)).astype(jnp.complex64)


if __name__ == "__main__":
    key = jax.random.PRNGKey(0)
    k1, k2, k3, k4, k5, k6 = jax.random.split(key, 6)

    gamma = 0.05

    # --- small case (single grid point) -----------------------------------
    B, H, W = 2, 16, 16
    net_input = jax.random.normal(k1, (B, 2, H, W), dtype=jnp.float32)
    minus_output = (
        jax.random.normal(k2, (B, H, W), dtype=jnp.float32)
        + 1j * jax.random.normal(k3, (B, H, W), dtype=jnp.float32)
    ).astype(jnp.complex64)

    out = multiple_original_layer(net_input, minus_output, gamma=gamma)
    out = jax.block_until_ready(out)

    ref = _reference(gamma, net_input, minus_output)
    assert out.shape == ref.shape and out.dtype == ref.dtype
    assert jnp.allclose(out, ref, atol=1e-6, rtol=1e-6)

    # --- multi-tile case (forces several grid steps via small tile budget) --
    B2, H2, W2 = 2, 64, 128
    net_input2 = jax.random.normal(k4, (B2, 2, H2, W2), dtype=jnp.float32)
    minus_output2 = (
        jax.random.normal(k5, (B2, H2, W2), dtype=jnp.float32)
        + 1j * jax.random.normal(k6, (B2, H2, W2), dtype=jnp.float32)
    ).astype(jnp.complex64)

    out2 = multiple_original_layer(
        net_input2, minus_output2, gamma=gamma, max_tile_bytes=32 * 1024
    )
    out2 = jax.block_until_ready(out2)

    ref2 = _reference(gamma, net_input2, minus_output2)
    assert out2.shape == ref2.shape and out2.dtype == ref2.dtype
    assert jnp.allclose(out2, ref2, atol=1e-6, rtol=1e-6)

    print("KERNEL_OK")
</pallas_src>

<mosaic_0001>
module attributes {stable_mosaic.version = 11 : i64} {
  func.func @kernel(%arg0: i32, %arg1: memref<1x1024xf32, #tpu.memory_space<vmem>>, %arg2: memref<1x1024xf32, #tpu.memory_space<vmem>>, %arg3: memref<1x1024xf32, #tpu.memory_space<vmem>>) attributes {dimension_semantics = [#tpu.dimension_semantics<parallel>], iteration_bounds = array<i64: 1>, scalar_prefetch = 0 : i64, scratch_operands = 0 : i64, tpu.core_type = #tpu.core_type<tc>, window_params = [{transform_indices = @transform_0, window_bounds = array<i64: 1, 1024>}, {transform_indices = @transform_1, window_bounds = array<i64: 1, 1024>}, {transform_indices = @transform_2, window_bounds = array<i64: 1, 1024>}]} {
    %c0 = arith.constant 0 : index
    %c0_0 = arith.constant 0 : index
    %0 = vector.load %arg1[%c0, %c0_0] : memref<1x1024xf32, #tpu.memory_space<vmem>>, vector<1x1024xf32>
    %c0_1 = arith.constant 0 : index
    %c0_2 = arith.constant 0 : index
    %1 = vector.load %arg2[%c0_1, %c0_2] : memref<1x1024xf32, #tpu.memory_space<vmem>>, vector<1x1024xf32>
    %2 = arith.subf %0, %1 : vector<1x1024xf32>
    %cst = arith.constant 5.000000e-02 : f32
    %3 = vector.broadcast %cst : f32 to vector<1x1024xf32>
    %4 = arith.mulf %3, %2 : vector<1x1024xf32>
    %c0_3 = arith.constant 0 : index
    %c0_4 = arith.constant 0 : index
    %5 = vector.load %arg3[%c0_3, %c0_4] : memref<1x1024xf32, #tpu.memory_space<vmem>>, vector<1x1024xf32>
    tpu.vector_store %arg3[%c0_3, %c0_4], %4 {strides = array<i32>} : memref<1x1024xf32, #tpu.memory_space<vmem>>, vector<1x1024xf32>,
    return
  }
  func.func @transform_0(%arg0: i32) -> (i32, i32) {
    %c0_i32 = arith.constant 0 : i32
    %c0_i32_0 = arith.constant 0 : i32
    return %arg0, %c0_i32 : i32, i32
  }
  func.func @transform_1(%arg0: i32) -> (i32, i32) {
    %c0_i32 = arith.constant 0 : i32
    %c0_i32_0 = arith.constant 0 : i32
    return %arg0, %c0_i32 : i32, i32
  }
  func.func @transform_2(%arg0: i32) -> (i32, i32) {
    %c0_i32 = arith.constant 0 : i32
    %c0_i32_0 = arith.constant 0 : i32
    return %arg0, %c0_i32 : i32, i32
  }
}

</mosaic_0001>

<bundles_post_ra>
// kernel: custom-call
= control target key start
LH: loop header
LB: loop body
LE: loop exit
PB: predicated region body
PF: predicated region fallthrough
CT: control target
= control target key end

     0   :  { %2 = vsyncpa [#allocation0], 0  ;;  %s61_s0 = inlined_call_operand.hbm [shape: c64[2,16,16], index: 0, kind: input, shape index: {}]   ;;  %s62_s1 = inlined_call_operand.vmem [shape: f32[2,16,16], index: 1, kind: output, shape index: {}]  }
   0x1   :  { %s3_s8 = sshll.u32 %s62_s1, 4  ;;  %s9_s11 = scalar_lea.hbm %s61_s0, 512  ;;  %s4_s8 = int_to_ptr.vmem [resolvable:$true] %s3_s8 }
   0x2   :  { %p10_p0 = scmp.ne.s32.totalorder %s61_s0, %s9_s11  ;;  %s11_s16 = scalar_lea.hbm %s61_s0, 1024 }
   0x3   :  { %p12_p1 = scmp.lt.u32.totalorder %s11_s16, %s9_s11  ;;  %p13_p2 = scmp.lt.u32.totalorder %s9_s11, %s61_s0 }
   0x5   :  { %p14_p3 = por %p13_p2, %p12_p1 }
   0x7   :  { %p15_p4 = pnand %p14_p3, %p10_p0 }
   0x9   :  { %18 = shalt.err (!%p15_p4)  }
   0xa   :  { %s19_s1 = scalar_lea.vmem %s4_s8, 512  ;;  %p24_p6 = scmp.lt.s32.totalorder %s4_s8, %s4_s8 }
   0xb   :  { %p20_p5 = scmp.ne.s32.totalorder %s4_s8, %s19_s1  ;;  %p25_p7 = scmp.lt.s32.totalorder %s19_s1, %s19_s1 }
   0xd   :  { %p26_p8 = por %p25_p7, %p24_p6 }
   0xf   :  { %p27_p9 = pnand %p26_p8, %p20_p5 }
  0x11   :  { %30 = shalt.err (!%p27_p9)  }
  0x12   :  { %6 = dma.hbm_to_vmem [thread:$0]  %s61_s0, 512, %s4_s8, [#allocation0] }
  0x13   :  { %31 = dma.done.wait [#allocation0], 512  }
  0x14   :  { %32 = vsyncadd [#allocation0], 4294966784 }
  0x15   :  { %8 = vsyncpa [#allocation0], 1 }

// kernel: custom-call.1
= control target key start
LH: loop header
LB: loop body
LE: loop exit
PB: predicated region body
PF: predicated region fallthrough
CT: control target
= control target key end

     0   :  { %s59_s0 = inlined_call_operand.hbm [shape: c64[2,16,16], index: 0, kind: input, shape index: {}]   ;;  %s60_s1 = inlined_call_operand.vmem [shape: f32[2,16,16], index: 1, kind: output, shape index: {}]  }
   0x1   :  { %s2_s8 = scalar_lea.hbm %s59_s0, 512 }
   0x2   :  { %3 = vsyncpa [#allocation0], 0  ;;  %s4_s11 = sshll.u32 %s60_s1, 4  ;;  %s34_s14 = scalar_lea.hbm %s59_s0, 1024  ;;  %s5_s11 = int_to_ptr.vmem [resolvable:$true] %s4_s11 }
   0x3   :  { %p11_p0 = scmp.ne.s32.totalorder %s2_s8, %s34_s14  ;;  %p13_p1 = scmp.lt.u32.totalorder %s2_s8, %s59_s0 }
   0x4   :  { %p14_p2 = scmp.lt.u32.totalorder %s34_s14, %s34_s14  ;;  %p16_p4 = scmp.lt.u32.totalorder %s34_s14, %s2_s8 }
   0x6   :  { %p15_p3 = por %p14_p2, %p13_p1 }
   0x8   :  { %p17_p5 = por %p16_p4, %p15_p3 }
   0xa   :  { %p18_p6 = pnand %p17_p5, %p11_p0 }
   0xc   :  { %21 = shalt.err (!%p18_p6)  }
   0xd   :  { %s22_s17 = scalar_lea.vmem %s5_s11, 512  ;;  %p27_p8 = scmp.lt.s32.totalorder %s5_s11, %s5_s11 }
   0xe   :  { %p23_p7 = scmp.ne.s32.totalorder %s5_s11, %s22_s17  ;;  %p28_p9 = scmp.lt.s32.totalorder %s22_s17, %s22_s17 }
  0x10   :  { %p29_p10 = por %p28_p9, %p27_p8 }
  0x12   :  { %p30_p11 = pnand %p29_p10, %p23_p7 }
  0x14   :  { %33 = shalt.err (!%p30_p11)  }
  0x15   :  { %7 = dma.hbm_to_vmem [thread:$0]  %s2_s8, 512, %s5_s11, [#allocation0] }
  0x16   :  { %35 = dma.done.wait [#allocation0], 512  }
  0x17   :  { %36 = vsyncadd [#allocation0], 4294966784 }
  0x18   :  { %9 = vsyncpa [#allocation0], 1 }

// kernel: custom-call.2
= control target key start
LH: loop header
LB: loop body
LE: loop exit
PB: predicated region body
PF: predicated region fallthrough
CT: control target
= control target key end

     0   :  { %s126_s0 = inlined_call_operand.vmem [shape: f32[2,16,16], index: 0, kind: input, shape index: {}]   ;;  %s127_s1 = inlined_call_operand.vmem [shape: f32[2,16,16], index: 1, kind: input, shape index: {}]   ;;  %s128_s2 = inlined_call_operand.hbm [shape: c64[2,16,16], index: 2, kind: output, shape index: {}]  }
   0x1   :  { %s87_s11 = scalar_lea.hbm %s128_s2, 512 }
   0x2   :  { %4 = vsyncpa [#allocation0], 0  ;;  %s5_s14 = sshll.u32 %s126_s0, 4  ;;  %s6_s14 = int_to_ptr.vmem [resolvable:$true] %s5_s14 }
   0x3   :  { %s18_s15 = scalar_lea.vmem %s6_s14, 512  ;;  %p23_p1 = scmp.lt.s32.totalorder %s6_s14, %s6_s14 }
   0x4   :  { %p19_p0 = scmp.ne.s32.totalorder %s6_s14, %s18_s15  ;;  %p24_p2 = scmp.lt.s32.totalorder %s18_s15, %s18_s15 }
   0x6   :  { %p25_p3 = por %p24_p2, %p23_p1 }
   0x8   :  { %p26_p4 = pnand %p25_p3, %p19_p0 }
   0xa   :  { %29 = shalt.err (!%p26_p4)  }
   0xb   :  { %p31_p5 = scmp.ne.s32.totalorder %s128_s2, %s87_s11  ;;  %s32_s0 = scalar_lea.hbm %s128_s2, 1024 }
   0xc   :  { %p33_p6 = scmp.lt.u32.totalorder %s32_s0, %s87_s11  ;;  %p34_p7 = scmp.lt.u32.totalorder %s87_s11, %s128_s2 }
   0xe   :  { %p35_p8 = por %p34_p7, %p33_p6 }
  0x10   :  { %p36_p9 = pnand %p35_p8, %p31_p5 }
  0x12   :  { %39 = shalt.err (!%p36_p9)  }
  0x13   :  { %8 = dma.vmem_to_hbm [thread:$0]  %s6_s14, 512, %s128_s2, [#allocation0] }
  0x14   :  { %65 = dma.done.wait [#allocation0], 512  }
  0x15   :  { %66 = vsyncadd [#allocation0], 4294966784 }
  0x16   :  { %10 = vsyncpa [#allocation0], 1 }
  0x17   :  { %11 = vsyncpa [#allocation1], 0  ;;  %s12_s28 = sshll.u32 %s127_s1, 4  ;;  %s13_s28 = int_to_ptr.vmem [resolvable:$true] %s12_s28 }
  0x18   :  { %s40_s29 = scalar_lea.vmem %s13_s28, 512  ;;  %p45_p11 = scmp.lt.s32.totalorder %s13_s28, %s13_s28 }
  0x19   :  { %p41_p10 = scmp.ne.s32.totalorder %s13_s28, %s40_s29  ;;  %p46_p12 = scmp.lt.s32.totalorder %s40_s29, %s40_s29 }
  0x1b   :  { %p47_p13 = por %p46_p12, %p45_p11 }
  0x1d   :  { %p48_p0 = pnand %p47_p13, %p41_p10 }
  0x1f   :  { %51 = shalt.err (!%p48_p0)  }
  0x20   :  { %p53_p1 = scmp.ne.s32.totalorder %s87_s11, %s32_s0  ;;  %p56_p2 = scmp.lt.u32.totalorder %s32_s0, %s32_s0 }
  0x22   :  { %p57_p3 = por %p56_p2, %p34_p7 }
  0x24   :  { %p59_p4 = por %p57_p3, %p33_p6 }
  0x26   :  { %p60_p5 = pnand %p59_p4, %p53_p1 }
  0x28   :  { %63 = shalt.err (!%p60_p5)  }
  0x29   :  { %15 = dma.vmem_to_hbm [thread:$0]  %s13_s28, 512, %s87_s11, [#allocation1] }
  0x2a   :  { %67 = dma.done.wait [#allocation1], 512  }
  0x2b   :  { %68 = vsyncadd [#allocation1], 4294966784 }
  0x2c   :  { %17 = vsyncpa [#allocation1], 1 }

// kernel: multiple_original_layer.1
= control target key start
LH: loop header
LB: loop body
LE: loop exit
PB: predicated region body
PF: predicated region fallthrough
CT: control target
= control target key end

     0   :  { %s44_s0 = inlined_call_operand.vmem [shape: f32[1,1024], index: 0, kind: input, shape index: {}]   ;;  %s45_s1 = inlined_call_operand.vmem [shape: f32[1,1024], index: 1, kind: input, shape index: {}]   ;;  %s46_s2 = inlined_call_operand.vmem [shape: f32[1,1024], index: 2, kind: output, shape index: {}]  }
   0x1   :  { %v11_v0 = vld [vmem:[%s44_s0] sm:$0xff] }
   0x2   :  { %v12_v1 = vld [vmem:[%s45_s1] sm:$0xff] }
   0x3   :  { %v13_v2 = vsub.f32 %v11_v0, %v12_v1 }
   0x5   :  { %v14_v3 = vmul.f32 0.05, %v13_v2 }
   0x7   :  { %15 = vst [vmem:[%s46_s2] sm:$0xff] %v14_v3 }

</bundles_post_ra>
